<compile_context>
chip_gen: v5e
topology: v5e:2x2
jax: 0.10.0
libtpu: 0.0.40
codegen_flags: <defaults>
</compile_context>

<pallas_src>
import functools

import jax
import jax.numpy as jnp
from jax.experimental import pallas as pl
from jax.experimental.pallas import tpu as pltpu

# Model constants (mirror the PyTorch script)
N_CLASS = 26      # len('abcdefghijklmnopqrstuvwxyz')
N_HIDDEN = 128
OUT_PAD = 128     # lane-dense padded readout width (>= N_CLASS, multiple of 128)


def _text_lstm_kernel(seq_len, n_hidden,
                      x_proj_ref,   # (seq_len, batch_pad, 4*n_hidden) f32
                      h0_ref,       # (batch_pad, n_hidden)            f32
                      c0_ref,       # (batch_pad, n_hidden)            f32
                      w_hh_t_ref,   # (n_hidden, 4*n_hidden)           bf16 (W_hh^T, [i,f,o,g])
                      w_out_ref,    # (n_hidden, OUT_PAD)              bf16 (zero-padded)
                      b_out_ref,    # (1, OUT_PAD)                     f32  (zero-padded)
                      out_ref):     # (batch_pad, OUT_PAD)             f32
    H = n_hidden

    # Hoist the recurrent weight load out of the unrolled time loop: one load,
    # reused by every jnp.dot, instead of re-materializing 32 vregs per step
    # on the serial h-dependency chain.
    w_hh = w_hh_t_ref[...]

    h = h0_ref[...]   # f32
    c = c0_ref[...]   # f32

    # Static unrolled time loop (seq_len is tiny & static). Only the
    # hidden-state matmul remains on the serial dependency chain; the input
    # projection (incl. bias) was precomputed in the wrapper.
    for t in range(seq_len):
        gates = x_proj_ref[t] + jnp.dot(h.astype(jnp.bfloat16), w_hh,
                                        preferred_element_type=jnp.float32)
        # Gate order after wrapper reordering: [i, f, o, g].
        sig = jax.nn.sigmoid(gates[:, :3 * H])          # one EUP stream for i,f,o
        i_g = sig[:, 0 * H:1 * H]
        f_g = sig[:, 1 * H:2 * H]
        o_g = sig[:, 2 * H:3 * H]
        g_g = jnp.tanh(gates[:, 3 * H:])                # one tanh stream for g
        c = f_g * c + i_g * g_g                         # f32 VPU math
        h = o_g * jnp.tanh(c)

    # outputs[-1] @ W + b (lane-dense padded readout).
    out_ref[...] = (jnp.dot(h.astype(jnp.bfloat16), w_out_ref[...],
                            preferred_element_type=jnp.float32)
                    + b_out_ref[...])


def _reorder_gates(m):
    """Reorder stacked LSTM gate blocks along axis 0 from [i,f,g,o] to [i,f,o,g]."""
    i, f, g, o = jnp.split(m, 4, axis=0)
    return jnp.concatenate([i, f, o, g], axis=0)


def text_lstm_forward(hidden_state, cell_state, X, params):
    """Pallas equivalent of TextLSTM.forward(hidden_state, cell_state, X)."""
    w_ih, w_hh, b_ih, b_hh, W, b = (params["w_ih"], params["w_hh"],
                                    params["b_ih"], params["b_hh"],
                                    params["W"], params["b"])
    batch, seq_len, n_class = X.shape
    n_hidden = w_hh.shape[1]
    H4 = 4 * n_hidden

    # ---- parameter / input plumbing (plain JAX, outside the hot path) ----
    # Pad batch to a multiple of 8 so every per-step (batch, 4H) slab is an
    # aligned (8,128)-tile slice inside the kernel.
    batch_pad = batch + (-batch % 8)
    pad = batch_pad - batch

    # Gate-reordered ([i,f,o,g]) weights.
    w_ih_r = _reorder_gates(w_ih)                                     # (4H, n_class)
    w_hh_t = _reorder_gates(w_hh).T.astype(jnp.bfloat16)              # (n_hidden, 4H)
    b_gates = _reorder_gates(b_ih + b_hh).astype(jnp.float32)         # (4H,)

    # Input projection hoisted entirely into the wrapper.  X is one-hot, so
    # this is equivalent to a row gather of W_ih^T rows (plus bias); keeping it
    # as an einsum preserves exact semantics for arbitrary X while removing
    # the ragged K=26 matmul and the W_ih operand DMA from the Pallas kernel.
    x_tm = jnp.transpose(X, (1, 0, 2)).astype(jnp.float32)            # (seq, batch, n_class)
    x_proj = jnp.einsum('tbc,gc->tbg', x_tm, w_ih_r.astype(jnp.float32)) + b_gates
    x_proj = jnp.pad(x_proj, ((0, 0), (0, pad), (0, 0)))              # (seq, batch_pad, 4H)

    h0 = jnp.pad(hidden_state.reshape(batch, n_hidden).astype(jnp.float32),
                 ((0, pad), (0, 0)))
    c0 = jnp.pad(cell_state.reshape(batch, n_hidden).astype(jnp.float32),
                 ((0, pad), (0, 0)))

    # Lane-dense padded readout weights.
    w_out_pad = jnp.zeros((n_hidden, OUT_PAD), jnp.float32).at[:, :n_class].set(W)
    w_out_pad = w_out_pad.astype(jnp.bfloat16)
    b_out_pad = jnp.zeros((1, OUT_PAD), jnp.float32).at[:, :n_class].set(b)

    kernel = functools.partial(_text_lstm_kernel, seq_len, n_hidden)

    inputs = (x_proj, h0, c0, w_hh_t, w_out_pad, b_out_pad)
    out_bytes = batch_pad * OUT_PAD * 4
    cost = pl.CostEstimate(
        flops=(2 * seq_len * batch_pad * n_hidden * H4      # recurrent matmuls
               + 2 * batch_pad * n_hidden * OUT_PAD),        # readout
        transcendentals=5 * seq_len * batch_pad * n_hidden,
        bytes_accessed=sum(int(a.size) * a.dtype.itemsize for a in inputs) + out_bytes,
    )

    vmem_spec = pl.BlockSpec(memory_space=pltpu.MemorySpace.VMEM)
    out_padded = pl.pallas_call(
        kernel,
        out_shape=jax.ShapeDtypeStruct((batch_pad, OUT_PAD), jnp.float32),
        in_specs=[vmem_spec] * len(inputs),
        out_specs=vmem_spec,
        cost_estimate=cost,
    )(*inputs)

    return out_padded[:batch, :n_class]


def init_params(key, n_class=N_CLASS, n_hidden=N_HIDDEN):
    """Deterministic synthetic parameters, matching nn.LSTM / nn.Parameter shapes."""
    ks = jax.random.split(key, 6)
    return {
        # nn.LSTM(input_size=n_class, hidden_size=n_hidden), gate order i,f,g,o
        "w_ih": jax.random.normal(ks[0], (4 * n_hidden, n_class), jnp.float32) * 0.1,
        "w_hh": jax.random.normal(ks[1], (4 * n_hidden, n_hidden), jnp.float32) * 0.1,
        "b_ih": jax.random.normal(ks[2], (4 * n_hidden,), jnp.float32) * 0.1,
        "b_hh": jax.random.normal(ks[3], (4 * n_hidden,), jnp.float32) * 0.1,
        # self.W, self.b
        "W": jax.random.normal(ks[4], (n_hidden, n_class), jnp.float32),
        "b": jax.random.normal(ks[5], (n_class,), jnp.float32),
    }


def _reference_forward(hidden_state, cell_state, X, params):
    """Pure-JAX f32 reference reproducing the PyTorch semantics."""
    w_ih, w_hh = params["w_ih"], params["w_hh"]
    b_ih, b_hh = params["b_ih"], params["b_hh"]
    W, b = params["W"], params["b"]
    H = w_hh.shape[1]
    x = jnp.transpose(X, (1, 0, 2))            # (seq, batch, n_class)
    h = hidden_state[0]
    c = cell_state[0]
    for t in range(x.shape[0]):
        gates = x[t] @ w_ih.T + b_ih + h @ w_hh.T + b_hh
        i = jax.nn.sigmoid(gates[:, 0 * H:1 * H])
        f = jax.nn.sigmoid(gates[:, 1 * H:2 * H])
        g = jnp.tanh(gates[:, 2 * H:3 * H])
        o = jax.nn.sigmoid(gates[:, 3 * H:4 * H])
        c = f * c + i * g
        h = o * jnp.tanh(c)
    return h @ W + b


if __name__ == "__main__":
    key = jax.random.PRNGKey(0)
    pkey, xkey = jax.random.split(key)

    batch, seq_len = 8, 3   # e.g. 3-char prefixes like the original dataset
    params = init_params(pkey)

    # One-hot character inputs, like the original np.eye(n_class)[indices]
    char_ids = jax.random.randint(xkey, (batch, seq_len), 0, N_CLASS)
    X = jax.nn.one_hot(char_ids, N_CLASS, dtype=jnp.float32)       # (batch, seq, n_class)

    hidden_state = jnp.zeros((1, batch, N_HIDDEN), jnp.float32)
    cell_state = jnp.zeros((1, batch, N_HIDDEN), jnp.float32)

    out = text_lstm_forward(hidden_state, cell_state, X, params)
    out = jax.block_until_ready(out)

    ref = _reference_forward(hidden_state, cell_state, X, params)
    assert out.shape == (batch, N_CLASS)
    # Tolerance reflects the deliberate bf16 cast of MXU operands (f32 accumulation).
    assert jnp.allclose(out, ref, atol=5e-2, rtol=5e-2), float(jnp.max(jnp.abs(out - ref)))

    print("KERNEL_OK")
</pallas_src>

<mosaic_0001>
module attributes {stable_mosaic.version = 11 : i64} {
  func.func @_text_lstm_kernel(%arg0: memref<3x8x512xf32, #tpu.memory_space<vmem>>, %arg1: memref<8x128xf32, #tpu.memory_space<vmem>>, %arg2: memref<8x128xf32, #tpu.memory_space<vmem>>, %arg3: memref<128x512xbf16, #tpu.memory_space<vmem>>, %arg4: memref<128x128xbf16, #tpu.memory_space<vmem>>, %arg5: memref<1x128xf32, #tpu.memory_space<vmem>>, %arg6: memref<8x128xf32, #tpu.memory_space<vmem>>) attributes {dimension_semantics = [], scalar_prefetch = 0 : i64, scratch_operands = 0 : i64, tpu.core_type = #tpu.core_type<tc>} {
    %c0 = arith.constant 0 : index
    %c0_0 = arith.constant 0 : index
    %0 = vector.load %arg3[%c0, %c0_0] : memref<128x512xbf16, #tpu.memory_space<vmem>>, vector<128x512xbf16>
    %c0_1 = arith.constant 0 : index
    %c0_2 = arith.constant 0 : index
    %1 = vector.load %arg1[%c0_1, %c0_2] : memref<8x128xf32, #tpu.memory_space<vmem>>, vector<8x128xf32>
    %c0_3 = arith.constant 0 : index
    %c0_4 = arith.constant 0 : index
    %2 = vector.load %arg2[%c0_3, %c0_4] : memref<8x128xf32, #tpu.memory_space<vmem>>, vector<8x128xf32>
    %c0_5 = arith.constant 0 : index
    %c0_6 = arith.constant 0 : index
    %c0_7 = arith.constant 0 : index
    %3 = vector.load %arg0[%c0_5, %c0_6, %c0_7] : memref<3x8x512xf32, #tpu.memory_space<vmem>>, vector<1x8x512xf32>
    %4 = vector.shape_cast %3 : vector<1x8x512xf32> to vector<8x512xf32>
    %5 = arith.truncf %1 : vector<8x128xf32> to vector<8x128xbf16>
    %cst = arith.constant dense<0.000000e+00> : vector<8x512xf32>
    %6 = tpu.matmul %5, %0, %cst {dimension_numbers = #tpu.dot_dimension_numbers<[1], [0], [0], [1], [0, 0, 1, 1], [], []>} : vector<8x128xbf16>, vector<128x512xbf16>, vector<8x512xf32> -> vector<8x512xf32>
    %7 = arith.addf %4, %6 : vector<8x512xf32>
    %8 = vector.extract_strided_slice %7 {offsets = [0, 0], sizes = [8, 384], strides = [1, 1]} : vector<8x512xf32> to vector<8x384xf32>
    %9 = arith.negf %8 : vector<8x384xf32>
    %10 = math.exp %9 : vector<8x384xf32>
    %cst_8 = arith.constant 1.000000e+00 : f32
    %11 = vector.broadcast %cst_8 : f32 to vector<8x384xf32>
    %12 = arith.addf %11, %10 : vector<8x384xf32>
    %13 = arith.divf %11, %12 : vector<8x384xf32>
    %14 = vector.extract_strided_slice %13 {offsets = [0, 0], sizes = [8, 128], strides = [1, 1]} : vector<8x384xf32> to vector<8x128xf32>
    %15 = vector.extract_strided_slice %13 {offsets = [0, 128], sizes = [8, 128], strides = [1, 1]} : vector<8x384xf32> to vector<8x128xf32>
    %16 = vector.extract_strided_slice %13 {offsets = [0, 256], sizes = [8, 128], strides = [1, 1]} : vector<8x384xf32> to vector<8x128xf32>
    %17 = vector.extract_strided_slice %7 {offsets = [0, 384], sizes = [8, 128], strides = [1, 1]} : vector<8x512xf32> to vector<8x128xf32>
    %18 = math.tanh %17 : vector<8x128xf32>
    %19 = arith.mulf %15, %2 : vector<8x128xf32>
    %20 = arith.mulf %14, %18 : vector<8x128xf32>
    %21 = arith.addf %19, %20 : vector<8x128xf32>
    %22 = math.tanh %21 : vector<8x128xf32>
    %23 = arith.mulf %16, %22 : vector<8x128xf32>
    %c1 = arith.constant 1 : index
    %c0_9 = arith.constant 0 : index
    %c0_10 = arith.constant 0 : index
    %24 = vector.load %arg0[%c1, %c0_9, %c0_10] : memref<3x8x512xf32, #tpu.memory_space<vmem>>, vector<1x8x512xf32>
    %25 = vector.shape_cast %24 : vector<1x8x512xf32> to vector<8x512xf32>
    %26 = arith.truncf %23 : vector<8x128xf32> to vector<8x128xbf16>
    %cst_11 = arith.constant dense<0.000000e+00> : vector<8x512xf32>
    %27 = tpu.matmul %26, %0, %cst_11 {dimension_numbers = #tpu.dot_dimension_numbers<[1], [0], [0], [1], [0, 0, 1, 1], [], []>} : vector<8x128xbf16>, vector<128x512xbf16>, vector<8x512xf32> -> vector<8x512xf32>
    %28 = arith.addf %25, %27 : vector<8x512xf32>
    %29 = vector.extract_strided_slice %28 {offsets = [0, 0], sizes = [8, 384], strides = [1, 1]} : vector<8x512xf32> to vector<8x384xf32>
    %30 = arith.negf %29 : vector<8x384xf32>
    %31 = math.exp %30 : vector<8x384xf32>
    %cst_12 = arith.constant 1.000000e+00 : f32
    %32 = vector.broadcast %cst_12 : f32 to vector<8x384xf32>
    %33 = arith.addf %32, %31 : vector<8x384xf32>
    %34 = arith.divf %32, %33 : vector<8x384xf32>
    %35 = vector.extract_strided_slice %34 {offsets = [0, 0], sizes = [8, 128], strides = [1, 1]} : vector<8x384xf32> to vector<8x128xf32>
    %36 = vector.extract_strided_slice %34 {offsets = [0, 128], sizes = [8, 128], strides = [1, 1]} : vector<8x384xf32> to vector<8x128xf32>
    %37 = vector.extract_strided_slice %34 {offsets = [0, 256], sizes = [8, 128], strides = [1, 1]} : vector<8x384xf32> to vector<8x128xf32>
    %38 = vector.extract_strided_slice %28 {offsets = [0, 384], sizes = [8, 128], strides = [1, 1]} : vector<8x512xf32> to vector<8x128xf32>
    %39 = math.tanh %38 : vector<8x128xf32>
    %40 = arith.mulf %36, %21 : vector<8x128xf32>
    %41 = arith.mulf %35, %39 : vector<8x128xf32>
    %42 = arith.addf %40, %41 : vector<8x128xf32>
    %43 = math.tanh %42 : vector<8x128xf32>
    %44 = arith.mulf %37, %43 : vector<8x128xf32>
    %c2 = arith.constant 2 : index
    %c0_13 = arith.constant 0 : index
    %c0_14 = arith.constant 0 : index
    %45 = vector.load %arg0[%c2, %c0_13, %c0_14] : memref<3x8x512xf32, #tpu.memory_space<vmem>>, vector<1x8x512xf32>
    %46 = vector.shape_cast %45 : vector<1x8x512xf32> to vector<8x512xf32>
    %47 = arith.truncf %44 : vector<8x128xf32> to vector<8x128xbf16>
    %cst_15 = arith.constant dense<0.000000e+00> : vector<8x512xf32>
    %48 = tpu.matmul %47, %0, %cst_15 {dimension_numbers = #tpu.dot_dimension_numbers<[1], [0], [0], [1], [0, 0, 1, 1], [], []>} : vector<8x128xbf16>, vector<128x512xbf16>, vector<8x512xf32> -> vector<8x512xf32>
    %49 = arith.addf %46, %48 : vector<8x512xf32>
    %50 = vector.extract_strided_slice %49 {offsets = [0, 0], sizes = [8, 384], strides = [1, 1]} : vector<8x512xf32> to vector<8x384xf32>
    %51 = arith.negf %50 : vector<8x384xf32>
    %52 = math.exp %51 : vector<8x384xf32>
    %cst_16 = arith.constant 1.000000e+00 : f32
    %53 = vector.broadcast %cst_16 : f32 to vector<8x384xf32>
    %54 = arith.addf %53, %52 : vector<8x384xf32>
    %55 = arith.divf %53, %54 : vector<8x384xf32>
    %56 = vector.extract_strided_slice %55 {offsets = [0, 0], sizes = [8, 128], strides = [1, 1]} : vector<8x384xf32> to vector<8x128xf32>
    %57 = vector.extract_strided_slice %55 {offsets = [0, 128], sizes = [8, 128], strides = [1, 1]} : vector<8x384xf32> to vector<8x128xf32>
    %58 = vector.extract_strided_slice %55 {offsets = [0, 256], sizes = [8, 128], strides = [1, 1]} : vector<8x384xf32> to vector<8x128xf32>
    %59 = vector.extract_strided_slice %49 {offsets = [0, 384], sizes = [8, 128], strides = [1, 1]} : vector<8x512xf32> to vector<8x128xf32>
    %60 = math.tanh %59 : vector<8x128xf32>
    %61 = arith.mulf %57, %42 : vector<8x128xf32>
    %62 = arith.mulf %56, %60 : vector<8x128xf32>
    %63 = arith.addf %61, %62 : vector<8x128xf32>
    %64 = math.tanh %63 : vector<8x128xf32>
    %65 = arith.mulf %58, %64 : vector<8x128xf32>
    %66 = arith.truncf %65 : vector<8x128xf32> to vector<8x128xbf16>
    %c0_17 = arith.constant 0 : index
    %c0_18 = arith.constant 0 : index
    %67 = vector.load %arg4[%c0_17, %c0_18] : memref<128x128xbf16, #tpu.memory_space<vmem>>, vector<128x128xbf16>
    %cst_19 = arith.constant dense<0.000000e+00> : vector<8x128xf32>
    %68 = tpu.matmul %66, %67, %cst_19 {dimension_numbers = #tpu.dot_dimension_numbers<[1], [0], [0], [1], [0, 0, 1, 1], [], []>} : vector<8x128xbf16>, vector<128x128xbf16>, vector<8x128xf32> -> vector<8x128xf32>
    %c0_20 = arith.constant 0 : index
    %c0_21 = arith.constant 0 : index
    %69 = vector.load %arg5[%c0_20, %c0_21] : memref<1x128xf32, #tpu.memory_space<vmem>>, vector<1x128xf32>
    %70 = vector.broadcast %69 : vector<1x128xf32> to vector<8x128xf32>
    %71 = arith.addf %68, %70 : vector<8x128xf32>
    %c0_22 = arith.constant 0 : index
    %c0_23 = arith.constant 0 : index
    %72 = vector.load %arg6[%c0_22, %c0_23] : memref<8x128xf32, #tpu.memory_space<vmem>>, vector<8x128xf32>
    tpu.vector_store %arg6[%c0_22, %c0_23], %71 {strides = array<i32>} : memref<8x128xf32, #tpu.memory_space<vmem>>, vector<8x128xf32>,
    return
  }
}

</mosaic_0001>

<bundles_post_ra>
// kernel: tpu_custom_call.1
= control target key start
LH: loop header
LB: loop body
LE: loop exit
PB: predicated region body
PF: predicated region fallthrough
CT: control target
= control target key end

     0   :  { %11 = vsyncpa [#allocation3], 0  ;;  %s1426_s0 = inlined_call_operand.hbm [shape: f32[3,8,512], index: 0, kind: input, shape index: {}]   ;;  %s1427_s1 = inlined_call_operand.hbm [shape: f32[8,128], index: 1, kind: input, shape index: {}]   ;;  %s1428_s2 = inlined_call_operand.hbm [shape: f32[8,128], index: 2, kind: input, shape index: {}]   ;;  %s1429_s3 = inlined_call_operand.hbm [shape: bf16[128,512], index: 3, kind: input, shape index: {}]   ;;  %s1430_s4 = inlined_call_operand.hbm [shape: bf16[128,128], index: 4, kind: input, shape index: {}]   ;;  %s1431_s5 = inlined_call_operand.vmem [shape: f32[1,128], index: 5, kind: input, shape index: {}]   ;;  %s1432_s6 = inlined_call_operand.hbm [shape: f32[8,128], index: 6, kind: output, shape index: {}]  }
   0x1   :  { %12 = vsyncpa [#allocation6], 0 }
   0x2   :  { %13 = vsyncpa [#allocation9], 0  ;;  %s33_s23 = sshll.u32 %s1427_s1, 4  ;;  %s34_s23 = int_to_ptr.hbm [resolvable:$true] %s33_s23 }
   0x3   :  { %14 = vsyncpa [#allocation4], 0  ;;  %s1190_s24 = smov [#allocation5]   ;;  %s54_s28 = sshll.u32 %s1429_s3, 4  ;;  %s55_s28 = int_to_ptr.hbm [resolvable:$true] %s54_s28 }
   0x4   :  { %s35_s25 = sshll.u32 %s1190_s24, 4  ;;  %s1191_s29 = smov [#allocation8]   ;;  %s36_s25 = int_to_ptr.vmem [resolvable:$true] %s35_s25 }
   0x5   :  { %38 = dma.hbm_to_vmem [thread:$0]  %s34_s23, 128, %s36_s25, [#allocation6]  }
   0x6   :  { %s56_s30 = sshll.u32 %s1191_s29, 4  ;;  %s1192_s7 = smov 256   ;;  %s57_s30 = int_to_ptr.vmem [resolvable:$true] %s56_s30 }
   0x7   :  { %s1193_s8 = smov 16   ;;  %s19_s1 = sshll.u32 %s1426_s0, 4  ;;  %s20_s1 = int_to_ptr.hbm [resolvable:$true] %s19_s1 }
   0x8   :  { %62 = dma.hbm_to_vmem [thread:$0]  %s55_s28, 4096, %s57_s30, [#allocation9], %s1192_s7, %s1192_s7, %s1193_s8  }
   0x9   :  { %s1194_s11 = smov [#allocation2]   ;;  %s44_s3 = sshll.u32 %s1428_s2, 4  ;;  %s45_s3 = int_to_ptr.hbm [resolvable:$true] %s44_s3 }
   0xa   :  { %s21_s12 = sshll.u32 %s1194_s11, 4  ;;  %s1195_s15 = smov 512   ;;  %s22_s12 = int_to_ptr.vmem [resolvable:$true] %s21_s12 }
   0xb   :  { %s1196_s16 = smov 32   ;;  %s1197_s17 = smov [#allocation7]  }
   0xc   :  { %27 = dma.hbm_to_vmem [thread:$0]  %s20_s1, 1536, %s22_s12, [#allocation3], %s1195_s15, %s1195_s15, %s1196_s16  }
   0xd   :  { %s46_s18 = sshll.u32 %s1197_s17, 4  ;;  %s67_s21 = sshll.u32 %s1430_s4, 4  ;;  %s47_s18 = int_to_ptr.vmem [resolvable:$true] %s46_s18  ;;  %s68_s21 = int_to_ptr.hbm [resolvable:$true] %s67_s21 }
   0xe   :  { %49 = dma.hbm_to_vmem [thread:$0]  %s45_s3, 128, %s47_s18, [#allocation6]  }
   0xf   :  { %s1198_s0 = smov [#allocation10]   ;;  %s1199_s23 = smov 64  }
  0x10   :  { %s69_s22 = sshll.u32 %s1198_s0, 4  ;;  %s1200_s24 = smov 4   ;;  %s70_s22 = int_to_ptr.vmem [resolvable:$true] %s69_s22 }
  0x11   :  { %75 = dma.hbm_to_vmem [thread:$0]  %s68_s21, 1024, %s70_s22, [#allocation9], %s1199_s23, %s1199_s23, %s1200_s24  }
  0x12   :  { %1182 = dma.done.wait [#allocation3], 1536  }
  0x13   :  { %1183 = vsyncadd [#allocation3], 4294965760 }
  0x14   :  { %1184 = dma.done.wait [#allocation6], 256  }
  0x15   :  { %1185 = vsyncadd [#allocation6], 4294967040 }
  0x16   :  { %1186 = dma.done.wait [#allocation9], 5120  }
  0x17   :  { %1187 = vsyncadd [#allocation9], 4294962176  ;;  %v882_v0 = vld [vmem:[#allocation8 + $0xe0] sm:$0xf]  ;;  %v967_v1 = vld [vmem:[#allocation8 + $0xec] sm:$0xf0] }
  0x18   :  { %v965_v2 = vld [vmem:[#allocation8 + $0xe4] sm:$0xf]  ;;  %v1252_v3 = vor.u32 %v967_v1, %v882_v0  ;;  %v884_v4 = vld [vmem:[#allocation8 + $0xf0] sm:$0xf0]  ;;  %v890_v5 = vld [vmem:[#allocation8 + $0xe8] sm:$0xf] }
  0x19   :  { %v968_v6 = vld [vmem:[#allocation8 + $0xf4] sm:$0xf0]  ;;  %v1254_v7 = vor.u32 %v965_v2, %v884_v4  ;;  %v866_v9 = vld [vmem:[#allocation8 + $0xc0] sm:$0xf]  ;;  %v963_v10 = vld [vmem:[#allocation8 + $0xcc] sm:$0xf0] }
  0x1a   :  { %v1256_v8 = vor.u32 %v968_v6, %v890_v5  ;;  %v961_v11 = vld [vmem:[#allocation8 + $0xc4] sm:$0xf]  ;;  %297 = vmatpush.bf16.msra.mxu0 %v1252_v3  ;;  %v1259_v12 = vor.u32 %v963_v10, %v866_v9  ;;  %v868_v13 = vld [vmem:[#allocation8 + $0xd0] sm:$0xf0]  ;;  %v874_v14 = vld [vmem:[#allocation8 + $0xc8] sm:$0xf] }
  0x1b   :  { %v964_v15 = vld [vmem:[#allocation8 + $0xd4] sm:$0xf0]  ;;  %310 = vmatpush.bf16.msra.mxu1 %v1254_v7  ;;  %v1263_v16 = vor.u32 %v961_v11, %v868_v13  ;;  %v966_v18 = vld [vmem:[#allocation8 + $0xec] sm:$0xf]  ;;  %v892_v19 = vld [vmem:[#allocation8 + $0xf8] sm:$0xf0] }
  0x1c   :  { %323 = vmatpush.bf16.msra.mxu2 %v1256_v8  ;;  %v1265_v17 = vor.u32 %v964_v15, %v874_v14  ;;  %v850_v20 = vld [vmem:[#allocation8 + $0xa0] sm:$0xf]  ;;  %v1267_v21 = vor.u32 %v966_v18, %v892_v19  ;;  %v959_v22 = vld [vmem:[#allocation8 + $0xac] sm:$0xf0]  ;;  %v957_v23 = vld [vmem:[#allocation8 + $0xa4] sm:$0xf] }
  0x1d   :  { %v852_v24 = vld [vmem:[#allocation8 + $0xb0] sm:$0xf0]  ;;  %v858_v25 = vld [vmem:[#allocation8 + $0xa8] sm:$0xf]  ;;  %v960_v26 = vld [vmem:[#allocation8 + $0xb4] sm:$0xf0]  ;;  %v1271_v28 = vor.u32 %v959_v22, %v850_v20 }
  0x1e   :  { %v962_v27 = vld [vmem:[#allocation8 + $0xcc] sm:$0xf]  ;;  %298 = vmatpush.bf16.msra.mxu0 %v1259_v12  ;;  %336 = vmatpush.bf16.msra.mxu3 %v1267_v21  ;;  %v876_v29 = vld [vmem:[#allocation8 + $0xd8] sm:$0xf0]  ;;  %v834_v30 = vld [vmem:[#allocation8 + $0x80] sm:$0xf]  ;;  %v1275_v32 = vor.u32 %v957_v23, %v852_v24  ;;  %v1277_v33 = vor.u32 %v960_v26, %v858_v25 }
  0x1f   :  { %v955_v31 = vld [vmem:[#allocation8 + $0x8c] sm:$0xf0]  ;;  %311 = vmatpush.bf16.msra.mxu1 %v1263_v16  ;;  %v1279_v34 = vor.u32 %v962_v27, %v876_v29  ;;  %v953_v35 = vld [vmem:[#allocation8 + $0x84] sm:$0xf]  ;;  %v836_v36 = vld [vmem:[#allocation8 + $0x90] sm:$0xf0] }
  0x20   :  { %324 = vmatpush.bf16.msra.mxu2 %v1265_v17  ;;  %v842_v37 = vld [vmem:[#allocation8 + $0x88] sm:$0xf]  ;;  %v956_v38 = vld [vmem:[#allocation8 + $0x94] sm:$0xf0]  ;;  %v958_v39 = vld [vmem:[#allocation8 + $0xac] sm:$0xf]  ;;  %v1283_v41 = vor.u32 %v955_v31, %v834_v30  ;;  %v1289_v45 = vor.u32 %v953_v35, %v836_v36 }
  0x21   :  { %v860_v40 = vld [vmem:[#allocation8 + $0xb8] sm:$0xf0]  ;;  %v818_v43 = vld [vmem:[#allocation8 + $0x60] sm:$0xf]  ;;  %v951_v44 = vld [vmem:[#allocation8 + $0x6c] sm:$0xf0]  ;;  %v1291_v46 = vor.u32 %v956_v38, %v842_v37 }
  0x22   :  { %299 = vmatpush.bf16.msra.mxu0 %v1271_v28  ;;  %337 = vmatpush.bf16.msra.mxu3 %v1279_v34  ;;  %v1285_v42 = vor.u32 %v958_v39, %v860_v40  ;;  %v949_v47 = vld [vmem:[#allocation8 + $0x64] sm:$0xf]  ;;  %v954_v48 = vld [vmem:[#allocation8 + $0x8c] sm:$0xf]  ;;  %v844_v49 = vld [vmem:[#allocation8 + $0x98] sm:$0xf0]  ;;  %v1295_v53 = vor.u32 %v951_v44, %v818_v43 }
  0x23   :  { %312 = vmatpush.bf16.msra.mxu1 %v1275_v32  ;;  %v820_v50 = vld [vmem:[#allocation8 + $0x70] sm:$0xf0]  ;;  %v826_v51 = vld [vmem:[#allocation8 + $0x68] sm:$0xf]  ;;  %v952_v52 = vld [vmem:[#allocation8 + $0x74] sm:$0xf0]  ;;  %v1297_v54 = vor.u32 %v954_v48, %v844_v49 }
  0x24   :  { %325 = vmatpush.bf16.msra.mxu2 %v1277_v33  ;;  %v802_v55 = vld [vmem:[#allocation8 + $0x40] sm:$0xf]  ;;  %v947_v56 = vld [vmem:[#allocation8 + $0x4c] sm:$0xf0]  ;;  %v1301_v57 = vor.u32 %v949_v47, %v820_v50  ;;  %v1303_v58 = vor.u32 %v952_v52, %v826_v51  ;;  %v945_v59 = vld [vmem:[#allocation8 + $0x44] sm:$0xf] }
  0x25   :  { %v950_v60 = vld [vmem:[#allocation8 + $0x6c] sm:$0xf]  ;;  %v828_v61 = vld [vmem:[#allocation8 + $0x78] sm:$0xf0]  ;;  %v804_v62 = vld [vmem:[#allocation8 + $0x50] sm:$0xf0]  ;;  %v1307_v1 = vor.u32 %v947_v56, %v802_v55 }
  0x26   :  { %300 = vmatpush.bf16.msra.mxu0 %v1283_v41  ;;  %338 = vmatpush.bf16.msra.mxu3 %v1285_v42  ;;  %v810_v63 = vld [vmem:[#allocation8 + $0x48] sm:$0xf]  ;;  %v948_v0 = vld [vmem:[#allocation8 + $0x54] sm:$0xf0]  ;;  %v1309_v2 = vor.u32 %v950_v60, %v828_v61  ;;  %v786_v4 = vld [vmem:[#allocation8 + $0x20] sm:$0xf]  ;;  %v1313_v6 = vor.u32 %v945_v59, %v804_v62 }
  0x27   :  { %313 = vmatpush.bf16.msra.mxu1 %v1289_v45  ;;  %v943_v5 = vld [vmem:[#allocation8 + $0x2c] sm:$0xf0]  ;;  %v1315_v9 = vor.u32 %v948_v0, %v810_v63  ;;  %v941_v10 = vld [vmem:[#allocation8 + $0x24] sm:$0xf]  ;;  %v946_v11 = vld [vmem:[#allocation8 + $0x4c] sm:$0xf] }
  0x28   :  { %326 = vmatpush.bf16.msra.mxu2 %v1291_v46  ;;  %v812_v13 = vld [vmem:[#allocation8 + $0x58] sm:$0xf0]  ;;  %v788_v14 = vld [vmem:[#allocation8 + $0x30] sm:$0xf0]  ;;  %v794_v15 = vld [vmem:[#allocation8 + $0x28] sm:$0xf]  ;;  %v1319_v19 = vor.u32 %v943_v5, %v786_v4 }
  0x29   :  { %v944_v18 = vld [vmem:[#allocation8 + $0x34] sm:$0xf0]  ;;  %v1321_v20 = vor.u32 %v946_v11, %v812_v13  ;;  %v770_v22 = vld [vmem:[#allocation8] sm:$0xf]  ;;  %v939_v23 = vld [vmem:[#allocation8 + $0xc] sm:$0xf0]  ;;  %v1325_v24 = vor.u32 %v941_v10, %v788_v14 }
  0x2a   :  { %301 = vmatpush.bf16.msra.mxu0 %v1295_v53  ;;  %339 = vmatpush.bf16.msra.mxu3 %v1297_v54  ;;  %v1327_v25 = vor.u32 %v944_v18, %v794_v15  ;;  %v937_v26 = vld [vmem:[#allocation8 + $0x4] sm:$0xf]  ;;  %v942_v27 = vld [vmem:[#allocation8 + $0x2c] sm:$0xf]  ;;  %v796_v29 = vld [vmem:[#allocation8 + $0x38] sm:$0xf0]  ;;  %v1331_v36 = vor.u32 %v939_v23, %v770_v22 }
  0x2b   :  { %314 = vmatpush.bf16.msra.mxu1 %v1301_v57  ;;  %v772_v30 = vld [vmem:[#allocation8 + $0x10] sm:$0xf0]  ;;  %v778_v31 = vld [vmem:[#allocation8 + $0x8] sm:$0xf]  ;;  %v940_v35 = vld [vmem:[#allocation8 + $0x14] sm:$0xf0]  ;;  %v1333_v38 = vor.u32 %v942_v27, %v796_v29 }
  0x2c   :  { %327 = vmatpush.bf16.msra.mxu2 %v1303_v58  ;;  %v130_v37 = vld [vmem:[#allocation5] sm:$0xff]  ;;  %v1337_v39 = vor.u32 %v937_v26, %v772_v30  ;;  %v1339_v40 = vor.u32 %v940_v35, %v778_v31  ;;  %v938_v43 = vld [vmem:[#allocation8 + $0xc] sm:$0xf]  ;;  %v780_v44 = vld [vmem:[#allocation8 + $0x18] sm:$0xf0]  ;;  %s1201_s25 = smov [#allocation11]  }
  0x2d   :  { %v136_v47 = vpack.c.bf16 %v130_v37, %v130_v37  ;;  %v1345_v48 = vor.u32 %v938_v43, %v780_v44  ;;  %s754_s26 = sshll.u32 %s1201_s25, 4  ;;  %s756_s29 = sshll.u32 %s1432_s6, 4  ;;  %s755_s26 = int_to_ptr.vmem [resolvable:$true] %s754_s26  ;;  %s757_s29 = int_to_ptr.hbm [resolvable:$true] %s756_s29 }
  0x2e   :  { %302 = vmatpush.bf16.msra.mxu0 %v1307_v1  ;;  %340 = vmatpush.bf16.msra.mxu3 %v1309_v2 }
  0x2f   :  { %315 = vmatpush.bf16.msra.mxu1 %v1313_v6 }
  0x30   :  { %328 = vmatpush.bf16.msra.mxu2 %v1315_v9 }
  0x32   :  { %303 = vmatpush.bf16.msra.mxu0 %v1319_v19  ;;  %341 = vmatpush.bf16.msra.mxu3 %v1321_v20 }
  0x33   :  { %316 = vmatpush.bf16.msra.mxu1 %v1325_v24 }
  0x34   :  { %329 = vmatpush.bf16.msra.mxu2 %v1327_v25 }
  0x36   :  { %304 = vmatpush.bf16.msra.mxu0 %v1331_v36  ;;  %342 = vmatpush.bf16.msra.mxu3 %v1333_v38 }
  0x37   :  { %317 = vmatpush.bf16.msra.mxu1 %v1337_v39 }
  0x38   :  { %330 = vmatpush.bf16.msra.mxu2 %v1339_v40 }
  0x39   :  { %305 = vmatmul.bf16.vlgmr.msra.gmra.mxu0 %v136_v47 }
  0x3a   :  { %422 = vmatpush.bf16.msrb.mxu0 %v1252_v3  ;;  %318 = vmatmul.bf16.vlgmr.msra.gmra.mxu1 %v136_v47 }
  0x3b   :  { %435 = vmatpush.bf16.msrb.mxu1 %v1254_v7  ;;  %331 = vmatmul.bf16.vlgmr.msra.gmra.mxu2 %v136_v47 }
  0x3c   :  { %448 = vmatpush.bf16.msrb.mxu2 %v1256_v8  ;;  %343 = vmatpush.bf16.msra.mxu3 %v1345_v48 }
  0x3e   :  { %423 = vmatpush.bf16.msrb.mxu0 %v1259_v12 }
  0x3f   :  { %436 = vmatpush.bf16.msrb.mxu1 %v1263_v16  ;;  %344 = vmatmul.bf16.vlgmr.msra.gmra.mxu3 %v136_v47 }
  0x40   :  { %461 = vmatpush.bf16.msrb.mxu3 %v1267_v21  ;;  %449 = vmatpush.bf16.msrb.mxu2 %v1265_v17 }
  0x42   :  { %424 = vmatpush.bf16.msrb.mxu0 %v1271_v28 }
  0x43   :  { %437 = vmatpush.bf16.msrb.mxu1 %v1275_v32 }
  0x44   :  { %462 = vmatpush.bf16.msrb.mxu3 %v1279_v34  ;;  %450 = vmatpush.bf16.msrb.mxu2 %v1277_v33 }
  0x46   :  { %425 = vmatpush.bf16.msrb.mxu0 %v1283_v41 }
  0x47   :  { %438 = vmatpush.bf16.msrb.mxu1 %v1289_v45 }
  0x48   :  { %463 = vmatpush.bf16.msrb.mxu3 %v1285_v42  ;;  %451 = vmatpush.bf16.msrb.mxu2 %v1291_v46 }
  0x4a   :  { %426 = vmatpush.bf16.msrb.mxu0 %v1295_v53 }
  0x4b   :  { %439 = vmatpush.bf16.msrb.mxu1 %v1301_v57 }
  0x4c   :  { %464 = vmatpush.bf16.msrb.mxu3 %v1297_v54  ;;  %452 = vmatpush.bf16.msrb.mxu2 %v1303_v58 }
  0x4e   :  { %427 = vmatpush.bf16.msrb.mxu0 %v1307_v1 }
  0x4f   :  { %440 = vmatpush.bf16.msrb.mxu1 %v1313_v6 }
  0x50   :  { %465 = vmatpush.bf16.msrb.mxu3 %v1309_v2  ;;  %453 = vmatpush.bf16.msrb.mxu2 %v1315_v9 }
  0x52   :  { %428 = vmatpush.bf16.msrb.mxu0 %v1319_v19 }
  0x53   :  { %441 = vmatpush.bf16.msrb.mxu1 %v1325_v24 }
  0x54   :  { %466 = vmatpush.bf16.msrb.mxu3 %v1321_v20  ;;  %454 = vmatpush.bf16.msrb.mxu2 %v1327_v25 }
  0x56   :  { %429 = vmatpush.bf16.msrb.mxu0 %v1331_v36 }
  0x57   :  { %442 = vmatpush.bf16.msrb.mxu1 %v1337_v39 }
  0x58   :  { %467 = vmatpush.bf16.msrb.mxu3 %v1333_v38  ;;  %455 = vmatpush.bf16.msrb.mxu2 %v1339_v40 }
  0x5a   :  { %547 = vmatpush.bf16.msra.mxu0 %v1252_v3  ;;  %v132_v3 = vld [vmem:[#allocation2] sm:$0xff] }
  0x5b   :  { %560 = vmatpush.bf16.msra.mxu1 %v1254_v7  ;;  %v133_v7 = vld [vmem:[#allocation2 + $0x8] sm:$0xff] }
  0x5c   :  { %573 = vmatpush.bf16.msra.mxu2 %v1256_v8  ;;  %468 = vmatpush.bf16.msrb.mxu3 %v1345_v48 }
  0x5e   :  { %548 = vmatpush.bf16.msra.mxu0 %v1259_v12 }
  0x5f   :  { %561 = vmatpush.bf16.msra.mxu1 %v1263_v16 }
  0x60   :  { %586 = vmatpush.bf16.msra.mxu3 %v1267_v21  ;;  %574 = vmatpush.bf16.msra.mxu2 %v1265_v17 }
  0x62   :  { %549 = vmatpush.bf16.msra.mxu0 %v1271_v28 }
  0x63   :  { %562 = vmatpush.bf16.msra.mxu1 %v1275_v32  ;;  %v134_v32 = vld [vmem:[#allocation2 + $0x10] sm:$0xff] }
  0x64   :  { %587 = vmatpush.bf16.msra.mxu3 %v1279_v34  ;;  %575 = vmatpush.bf16.msra.mxu2 %v1277_v33 }
  0x66   :  { %550 = vmatpush.bf16.msra.mxu0 %v1283_v41 }
  0x67   :  { %563 = vmatpush.bf16.msra.mxu1 %v1289_v45 }
  0x68   :  { %588 = vmatpush.bf16.msra.mxu3 %v1285_v42  ;;  %576 = vmatpush.bf16.msra.mxu2 %v1291_v46 }
  0x6a   :  { %551 = vmatpush.bf16.msra.mxu0 %v1295_v53  ;;  %v135_v53 = vld [vmem:[#allocation2 + $0x18] sm:$0xff] }
  0x6b   :  { %564 = vmatpush.bf16.msra.mxu1 %v1301_v57 }
  0x6c   :  { %589 = vmatpush.bf16.msra.mxu3 %v1297_v54  ;;  %577 = vmatpush.bf16.msra.mxu2 %v1303_v58 }
  0x6e   :  { %552 = vmatpush.bf16.msra.mxu0 %v1307_v1 }
  0x6f   :  { %565 = vmatpush.bf16.msra.mxu1 %v1313_v6 }
  0x70   :  { %590 = vmatpush.bf16.msra.mxu3 %v1309_v2  ;;  %578 = vmatpush.bf16.msra.mxu2 %v1315_v9 }
  0x72   :  { %553 = vmatpush.bf16.msra.mxu0 %v1319_v19 }
  0x73   :  { %566 = vmatpush.bf16.msra.mxu1 %v1325_v24 }
  0x74   :  { %591 = vmatpush.bf16.msra.mxu3 %v1321_v20  ;;  %579 = vmatpush.bf16.msra.mxu2 %v1327_v25  ;;  %v131_v20 = vld [vmem:[#allocation7] sm:$0xff] }
  0x76   :  { %554 = vmatpush.bf16.msra.mxu0 %v1331_v36 }
  0x77   :  { %567 = vmatpush.bf16.msra.mxu1 %v1337_v39 }
  0x78   :  { %592 = vmatpush.bf16.msra.mxu3 %v1333_v38  ;;  %580 = vmatpush.bf16.msra.mxu2 %v1339_v40 }
  0x7c   :  { %593 = vmatpush.bf16.msra.mxu3 %v1345_v48  ;;  %v417_v48 = vld [vmem:[#allocation2 + $0x20] sm:$0xff] }
  0xb6   :  { %v306_v8 = vpop.f32.mrf.mxu0 }
  0xb7   :  { %v349_v12 = vadd.f32 %v306_v8, %v132_v3  ;;  %v319_v16 = vpop.f32.mrf.mxu1  ;;  %v418_v3 = vld [vmem:[#allocation2 + $0x28] sm:$0xff] }
  0xb8   :  { %v350_v17 = vadd.f32 %v319_v16, %v133_v7 }
  0xb9   :  { %v896_v21 = vmul.f32 -1.442695, %v349_v12 }
  0xba   :  { %v897_v28 = vmul.f32 -1.442695, %v350_v17 }
  0xbb   :  { %990 = vpow2.f32 %v896_v21 }
  0xbc   :  { %992 = vpow2.f32 %v897_v28  ;;  %v419_v28 = vld [vmem:[#allocation2 + $0x30] sm:$0xff] }
  0xbe   :  { %v332_v33 = vpop.f32.mrf.mxu2  ;;  %v308_v41 = vpop.f32.mrf.mxu0 }
  0xbf   :  { %v351_v34 = vadd.f32 %v332_v33, %v134_v32  ;;  %v321_v42 = vpop.f32.mrf.mxu1 }
  0xc1   :  { %v898_v45 = vmul.f32 -1.442695, %v351_v34  ;;  %v991_v46 = vpop.eup %990 }
  0xc2   :  { %v345_v49 = vpop.f32.mrf.mxu3  ;;  %v993_v50 = vpop.eup %992  ;;  %v362_v51 = vadd.f32 1.0, %v991_v46 }
  0xc3   :  { %994 = vpow2.f32 %v898_v45  ;;  %v363_v52 = vadd.f32 1.0, %v993_v50  ;;  %v352_v56 = vadd.f32 %v345_v49, %v135_v53 }
  0xc4   :  { %996 = vrcp.f32 %v362_v51  ;;  %v376_v1 = vand.u32 2147483648, %v362_v51  ;;  %v374_v5 = vand.u32 2147483647, %v362_v51  ;;  %vm370_vm2 = vweird.f32 %v362_v51 }
  0xc5   :  { %998 = vrcp.f32 %v363_v52  ;;  %v391_v2 = vand.u32 2147483648, %v363_v52  ;;  %v389_v9 = vand.u32 2147483647, %v363_v52  ;;  %vm385_vm3 = vweird.f32 %v363_v52 }
  0xc6   :  { %v334_v54 = vpop.f32.mrf.mxu2  ;;  %v377_v15 = vor.u32 1.1754944e-38, %v376_v1  ;;  %vm375_vm6 = vcmp.eq.f32.partialorder %v374_v5, 8.507059e+37 }
  0xc7   :  { %v392_v19 = vor.u32 1.1754944e-38, %v391_v2  ;;  %vm390_vm7 = vcmp.eq.f32.partialorder %v389_v9, 8.507059e+37  ;;  %v420_v54 = vld [vmem:[#allocation2 + $0x38] sm:$0xff] }
  0xc9   :  { %v995_v55 = vpop.eup %994 }
  0xca   :  { %v364_v57 = vadd.f32 1.0, %v995_v55  ;;  %v347_v58 = vpop.f32.mrf.mxu3  ;;  %v997_v59 = vpop.eup %996 }
  0xcb   :  { %v999_v60 = vpop.eup %998  ;;  %v366_v61 = vmul.f32 %v997_v59, %v362_v51  ;;  %vm371_vm0 = vweird.f32 %v997_v59 }
  0xcc   :  { %1000 = vrcp.f32 %v364_v57  ;;  %v381_v62 = vmul.f32 %v999_v60, %v363_v52  ;;  %vm386_vm1 = vweird.f32 %v999_v60  ;;  %vm372_vm4 = vmor %vm370_vm2, %vm371_vm0  ;;  %v406_v36 = vand.u32 2147483648, %v364_v57 }
  0xcd   :  { %1002 = vtanh.f32 %v352_v56  ;;  %v367_v63 = vsub.f32 1.0, %v366_v61  ;;  %vm387_vm5 = vmor %vm385_vm3, %vm386_vm1  ;;  %vm400_vm9 = vweird.f32 %v364_v57  ;;  %v404_v37 = vand.u32 2147483647, %v364_v57 }
  0xce   :  { %v382_v0 = vsub.f32 1.0, %v381_v62  ;;  %v407_v39 = vor.u32 1.1754944e-38, %v406_v36 }
  0xcf   :  { %v368_v4 = vmul.f32 %v997_v59, %v367_v63  ;;  %vm405_vm11 = vcmp.eq.f32.partialorder %v404_v37, 8.507059e+37 }
  0xd0   :  { %v383_v6 = vmul.f32 %v999_v60, %v382_v0 }
  0xd1   :  { %v369_v11 = vadd.f32 %v997_v59, %v368_v4 }
  0xd2   :  { %v1001_v10 = vpop.eup %1000  ;;  %v384_v18 = vadd.f32 %v999_v60, %v383_v6 }
  0xd3   :  { %v1003_v13 = vpop.eup %1002  ;;  %v396_v14 = vmul.f32 %v1001_v10, %v364_v57  ;;  %v373_v22 = vsel %vm372_vm4, %v997_v59, %v369_v11  ;;  %vm401_vm8 = vweird.f32 %v1001_v10 }
  0xd4   :  { %v378_v24 = vsel %vm375_vm6, %v377_v15, %v373_v22  ;;  %v388_v25 = vsel %vm387_vm5, %v999_v60, %v384_v18  ;;  %vm402_vm10 = vmor %vm400_vm9, %vm401_vm8 }
  0xd5   :  { %v397_v23 = vsub.f32 1.0, %v396_v14  ;;  %v393_v26 = vsel %vm390_vm7, %v392_v19, %v388_v25  ;;  %v412_v27 = vmul.f32 %v1003_v13, %v378_v24 }
  0xd6   :  { %v411_v29 = vmul.f32 %v393_v26, %v131_v20 }
  0xd7   :  { %v398_v30 = vmul.f32 %v1001_v10, %v397_v23 }
  0xd8   :  { %v1412_v31 = vadd.f32 %v412_v27, %v411_v29 }
  0xd9   :  { %v399_v35 = vadd.f32 %v1001_v10, %v398_v30 }
  0xda   :  { %1004 = vtanh.f32 %v1412_v31 }
  0xdb   :  { %v403_v38 = vsel %vm402_vm10, %v1001_v10, %v399_v35 }
  0xdc   :  { %v408_v43 = vsel %vm405_vm11, %v407_v39, %v403_v38 }
  0xe0   :  { %v1005_v40 = vpop.eup %1004 }
  0xe1   :  { %v415_v44 = vmul.f32 %v1005_v40, %v408_v43 }
  0xe3   :  { %v421_v47 = vpack.c.bf16 %v415_v44, %v415_v44 }
  0xe5   :  { %430 = vmatmul.bf16.vlgmr.msrb.gmra.mxu0 %v421_v47  ;;  %443 = vmatmul.bf16.vlgmr.msrb.gmra.mxu1 %v421_v47 }
  0xe6   :  { %456 = vmatmul.bf16.vlgmr.msrb.gmra.mxu2 %v421_v47  ;;  %469 = vmatmul.bf16.vlgmr.msrb.gmra.mxu3 %v421_v47  ;;  %v975_v47 = vld [vmem:[#allocation10 + $0x30] sm:$0xff] }
 0x162   :  { %v431_v7 = vpop.f32.mrf.mxu0  ;;  %v444_v8 = vpop.f32.mrf.mxu1 }
 0x163   :  { %v474_v12 = vadd.f32 %v431_v7, %v417_v48  ;;  %v475_v16 = vadd.f32 %v444_v8, %v418_v3  ;;  %v974_v48 = vld [vmem:[#allocation10 + $0x28] sm:$0xff]  ;;  %v973_v3 = vld [vmem:[#allocation10 + $0x20] sm:$0xff]  ;;  %v542_v7 = vld [vmem:[#allocation2 + $0x40] sm:$0xff] }
 0x164   :  { %v543_v8 = vld [vmem:[#allocation2 + $0x48] sm:$0xff] }
 0x165   :  { %v899_v17 = vmul.f32 -1.442695, %v474_v12  ;;  %v900_v21 = vmul.f32 -1.442695, %v475_v16  ;;  %v972_v12 = vld [vmem:[#allocation10 + $0x18] sm:$0xff] }
 0x167   :  { %1006 = vpow2.f32 %v899_v17 }
 0x168   :  { %1008 = vpow2.f32 %v900_v21 }
 0x169   :  { %v457_v32 = vpop.f32.mrf.mxu2  ;;  %v470_v33 = vpop.f32.mrf.mxu3 }
 0x16a   :  { %v476_v34 = vadd.f32 %v457_v32, %v419_v28  ;;  %v433_v41 = vpop.f32.mrf.mxu0  ;;  %v446_v42 = vpop.f32.mrf.mxu1  ;;  %v477_v58 = vadd.f32 %v470_v33, %v420_v54  ;;  %v971_v32 = vld [vmem:[#allocation10 + $0x10] sm:$0xff] }
 0x16b   :  { %v970_v41 = vld [vmem:[#allocation10 + $0x8] sm:$0xff]  ;;  %v544_v42 = vld [vmem:[#allocation2 + $0x50] sm:$0xff] }
 0x16c   :  { %v901_v45 = vmul.f32 -1.442695, %v476_v34 }
 0x16d   :  { %v1007_v46 = vpop.eup %1006 }
 0x16e   :  { %v1009_v49 = vpop.eup %1008  ;;  %v487_v50 = vadd.f32 1.0, %v1007_v46  ;;  %1010 = vpow2.f32 %v901_v45 }
 0x16f   :  { %v488_v51 = vadd.f32 1.0, %v1009_v49 }
 0x170   :  { %1012 = vrcp.f32 %v487_v50  ;;  %v501_v0 = vand.u32 2147483648, %v487_v50  ;;  %v499_v4 = vand.u32 2147483647, %v487_v50  ;;  %vm495_vm14 = vweird.f32 %v487_v50 }
 0x171   :  { %1014 = vrcp.f32 %v488_v51  ;;  %v459_v52 = vpop.f32.mrf.mxu2  ;;  %v472_v53 = vpop.f32.mrf.mxu3  ;;  %v516_v1 = vand.u32 2147483648, %v488_v51  ;;  %v514_v6 = vand.u32 2147483647, %v488_v51  ;;  %vm510_vm15 = vweird.f32 %v488_v51 }
 0x172   :  { %v502_v13 = vor.u32 1.1754944e-38, %v501_v0  ;;  %vm500_vm2 = vcmp.eq.f32.partialorder %v499_v4, 8.507059e+37  ;;  %v969_v52 = vld [vmem:[#allocation10] sm:$0xff] }
 0x173   :  { %v517_v15 = vor.u32 1.1754944e-38, %v516_v1  ;;  %vm515_vm3 = vcmp.eq.f32.partialorder %v514_v6, 8.507059e+37 }
 0x174   :  { %v1011_v55 = vpop.eup %1010 }
 0x175   :  { %v489_v56 = vadd.f32 1.0, %v1011_v55 }
 0x176   :  { %v1013_v57 = vpop.eup %1012 }
 0x177   :  { %v1015_v59 = vpop.eup %1014  ;;  %v491_v60 = vmul.f32 %v1013_v57, %v487_v50  ;;  %1016 = vrcp.f32 %v489_v56  ;;  %vm496_vm12 = vweird.f32 %v1013_v57  ;;  %v531_v35 = vand.u32 2147483648, %v489_v56 }
 0x178   :  { %v506_v61 = vmul.f32 %v1015_v59, %v488_v51  ;;  %1018 = vtanh.f32 %v477_v58  ;;  %vm511_vm13 = vweird.f32 %v1015_v59  ;;  %vm497_vm0 = vmor %vm495_vm14, %vm496_vm12  ;;  %vm525_vm5 = vweird.f32 %v489_v56 }
 0x179   :  { %v492_v62 = vsub.f32 1.0, %v491_v60  ;;  %vm512_vm1 = vmor %vm510_vm15, %vm511_vm13  ;;  %v529_v36 = vand.u32 2147483647, %v489_v56  ;;  %v532_v38 = vor.u32 1.1754944e-38, %v531_v35  ;;  %v545_v60 = vld [vmem:[#allocation2 + $0x58] sm:$0xff] }
 0x17a   :  { %v507_v63 = vsub.f32 1.0, %v506_v61 }
 0x17b   :  { %v493_v2 = vmul.f32 %v1013_v57, %v492_v62  ;;  %vm530_vm7 = vcmp.eq.f32.partialorder %v529_v36, 8.507059e+37 }
 0x17c   :  { %v508_v5 = vmul.f32 %v1015_v59, %v507_v63 }
 0x17d   :  { %v1017_v9 = vpop.eup %1016  ;;  %v494_v10 = vadd.f32 %v1013_v57, %v493_v2 }
 0x17e   :  { %v521_v11 = vmul.f32 %v1017_v9, %v489_v56  ;;  %v509_v14 = vadd.f32 %v1015_v59, %v508_v5  ;;  %v1019_v19 = vpop.eup %1018  ;;  %vm526_vm4 = vweird.f32 %v1017_v9 }
 0x17f   :  { %v498_v18 = vsel %vm497_vm0, %v1013_v57, %v494_v10  ;;  %vm527_vm6 = vmor %vm525_vm5, %vm526_vm4 }
 0x180   :  { %v522_v20 = vsub.f32 1.0, %v521_v11  ;;  %v503_v22 = vsel %vm500_vm2, %v502_v13, %v498_v18  ;;  %v513_v23 = vsel %vm512_vm1, %v1015_v59, %v509_v14 }
 0x181   :  { %v518_v24 = vsel %vm515_vm3, %v517_v15, %v513_v23  ;;  %v537_v25 = vmul.f32 %v1019_v19, %v503_v22 }
 0x182   :  { %v536_v26 = vmul.f32 %v518_v24, %v1412_v31  ;;  %v523_v27 = vmul.f32 %v1017_v9, %v522_v20  ;;  %v976_v31 = vld [vmem:[#allocation10 + $0x38] sm:$0xff] }
 0x183   :  { %735 = vmatpush.bf16.msrb.mxu0 %v976_v31 }
 0x184   :  { %v1416_v29 = vadd.f32 %v537_v25, %v536_v26  ;;  %v524_v30 = vadd.f32 %v1017_v9, %v523_v27 }
 0x186   :  { %1020 = vtanh.f32 %v1416_v29  ;;  %v528_v37 = vsel %vm527_vm6, %v1017_v9, %v524_v30 }
 0x187   :  { %v533_v40 = vsel %vm530_vm7, %v532_v38, %v528_v37  ;;  %736 = vmatpush.bf16.msrb.mxu0 %v975_v47 }
 0x18b   :  { %737 = vmatpush.bf16.msrb.mxu0 %v974_v48 }
 0x18c   :  { %v1021_v39 = vpop.eup %1020 }
 0x18d   :  { %v540_v43 = vmul.f32 %v1021_v39, %v533_v40 }
 0x18f   :  { %v546_v44 = vpack.c.bf16 %v540_v43, %v540_v43  ;;  %738 = vmatpush.bf16.msrb.mxu0 %v973_v3 }
 0x191   :  { %555 = vmatmul.bf16.vlgmr.msra.gmra.mxu0 %v546_v44  ;;  %568 = vmatmul.bf16.vlgmr.msra.gmra.mxu1 %v546_v44 }
 0x192   :  { %581 = vmatmul.bf16.vlgmr.msra.gmra.mxu2 %v546_v44  ;;  %594 = vmatmul.bf16.vlgmr.msra.gmra.mxu3 %v546_v44 }
 0x193   :  { %739 = vmatpush.bf16.msrb.mxu0 %v972_v12 }
 0x197   :  { %740 = vmatpush.bf16.msrb.mxu0 %v971_v32 }
 0x19b   :  { %741 = vmatpush.bf16.msrb.mxu0 %v970_v41 }
 0x19f   :  { %742 = vmatpush.bf16.msrb.mxu0 %v969_v52 }
 0x20e   :  { %v556_v16 = vpop.f32.mrf.mxu0  ;;  %v569_v17 = vpop.f32.mrf.mxu1 }
 0x20f   :  { %v599_v21 = vadd.f32 %v556_v16, %v542_v7  ;;  %v600_v28 = vadd.f32 %v569_v17, %v543_v8 }
 0x211   :  { %v902_v33 = vmul.f32 -1.442695, %v599_v21  ;;  %v903_v34 = vmul.f32 -1.442695, %v600_v28 }
 0x213   :  { %1022 = vpow2.f32 %v902_v33 }
 0x214   :  { %1024 = vpow2.f32 %v903_v34 }
 0x215   :  { %v582_v45 = vpop.f32.mrf.mxu2  ;;  %v595_v46 = vpop.f32.mrf.mxu3 }
 0x216   :  { %v601_v49 = vadd.f32 %v582_v45, %v544_v42  ;;  %v558_v50 = vpop.f32.mrf.mxu0  ;;  %v571_v51 = vpop.f32.mrf.mxu1  ;;  %v602_v0 = vadd.f32 %v595_v46, %v545_v60 }
 0x218   :  { %v904_v53 = vmul.f32 -1.442695, %v601_v49 }
 0x219   :  { %v1023_v54 = vpop.eup %1022 }
 0x21a   :  { %v1025_v55 = vpop.eup %1024  ;;  %v612_v56 = vadd.f32 1.0, %v1023_v54  ;;  %1026 = vpow2.f32 %v904_v53 }
 0x21b   :  { %v613_v57 = vadd.f32 1.0, %v1025_v55 }
 0x21c   :  { %1028 = vrcp.f32 %v612_v56  ;;  %v626_v9 = vand.u32 2147483648, %v612_v56  ;;  %v624_v13 = vand.u32 2147483647, %v612_v56  ;;  %vm620_vm10 = vweird.f32 %v612_v56 }
 0x21d   :  { %1030 = vrcp.f32 %v613_v57  ;;  %v584_v58 = vpop.f32.mrf.mxu2  ;;  %v597_v59 = vpop.f32.mrf.mxu3  ;;  %v641_v10 = vand.u32 2147483648, %v613_v57  ;;  %v639_v15 = vand.u32 2147483647, %v613_v57  ;;  %vm635_vm11 = vweird.f32 %v613_v57 }
 0x21e   :  { %v627_v22 = vor.u32 1.1754944e-38, %v626_v9  ;;  %vm625_vm14 = vcmp.eq.f32.partialorder %v624_v13, 8.507059e+37 }
 0x21f   :  { %v642_v24 = vor.u32 1.1754944e-38, %v641_v10  ;;  %vm640_vm15 = vcmp.eq.f32.partialorder %v639_v15, 8.507059e+37 }
 0x220   :  { %v1027_v61 = vpop.eup %1026 }
 0x221   :  { %v614_v62 = vadd.f32 1.0, %v1027_v61 }
 0x222   :  { %v1029_v63 = vpop.eup %1028 }
 0x223   :  { %v1031_v1 = vpop.eup %1030  ;;  %v616_v2 = vmul.f32 %v1029_v63, %v612_v56  ;;  %1032 = vrcp.f32 %v614_v62  ;;  %vm621_vm8 = vweird.f32 %v1029_v63  ;;  %v656_v44 = vand.u32 2147483648, %v614_v62 }
 0x224   :  { %v631_v4 = vmul.f32 %v1031_v1, %v613_v57  ;;  %1034 = vtanh.f32 %v602_v0  ;;  %vm636_vm9 = vweird.f32 %v1031_v1  ;;  %vm622_vm12 = vmor %vm620_vm10, %vm621_vm8  ;;  %vm650_vm1 = vweird.f32 %v614_v62 }
 0x225   :  { %v617_v5 = vsub.f32 1.0, %v616_v2  ;;  %vm637_vm13 = vmor %vm635_vm11, %vm636_vm9  ;;  %v654_v31 = vand.u32 2147483647, %v614_v62  ;;  %v657_v48 = vor.u32 1.1754944e-38, %v656_v44 }
 0x226   :  { %v632_v6 = vsub.f32 1.0, %v631_v4 }
 0x227   :  { %v618_v11 = vmul.f32 %v1029_v63, %v617_v5  ;;  %vm655_vm3 = vcmp.eq.f32.partialorder %v654_v31, 8.507059e+37 }
 0x228   :  { %v633_v14 = vmul.f32 %v1031_v1, %v632_v6 }
 0x229   :  { %v1033_v18 = vpop.eup %1032  ;;  %v619_v19 = vadd.f32 %v1029_v63, %v618_v11 }
 0x22a   :  { %v646_v20 = vmul.f32 %v1033_v18, %v614_v62  ;;  %v634_v23 = vadd.f32 %v1031_v1, %v633_v14  ;;  %v1035_v26 = vpop.eup %1034  ;;  %vm651_vm0 = vweird.f32 %v1033_v18 }
 0x22b   :  { %v623_v25 = vsel %vm622_vm12, %v1029_v63, %v619_v19  ;;  %vm652_vm2 = vmor %vm650_vm1, %vm651_vm0 }
 0x22c   :  { %v647_v27 = vsub.f32 1.0, %v646_v20  ;;  %v628_v30 = vsel %vm625_vm14, %v627_v22, %v623_v25  ;;  %v638_v35 = vsel %vm637_vm13, %v1031_v1, %v634_v23 }
 0x22d   :  { %v643_v36 = vsel %vm640_vm15, %v642_v24, %v638_v35  ;;  %v662_v37 = vmul.f32 %v1035_v26, %v628_v30 }
 0x22e   :  { %v661_v38 = vmul.f32 %v643_v36, %v1416_v29  ;;  %v648_v39 = vmul.f32 %v1033_v18, %v647_v27  ;;  %v989_v29 = vld [vmem:[%s1431_s5] ss:$0 sm:$0xff] }
 0x230   :  { %v663_v40 = vadd.f32 %v662_v37, %v661_v38  ;;  %v649_v43 = vadd.f32 %v1033_v18, %v648_v39 }
 0x232   :  { %1036 = vtanh.f32 %v663_v40  ;;  %v653_v47 = vsel %vm652_vm2, %v1033_v18, %v649_v43 }
 0x233   :  { %v658_v7 = vsel %vm655_vm3, %v657_v48, %v653_v47 }
 0x238   :  { %v1037_v3 = vpop.eup %1036 }
 0x239   :  { %v665_v8 = vmul.f32 %v1037_v3, %v658_v7 }
 0x23b   :  { %v666_v12 = vpack.c.bf16 %v665_v8, %v665_v8 }
 0x23d   :  { %743 = vmatmul.bf16.vlgmr.msrb.gmra.mxu0 %v666_v12 }
 0x2ba   :  { %v744_v16 = vpop.f32.mrf.mxu0 }
 0x2bb   :  { %v745_v17 = vadd.f32 %v989_v29, %v744_v16 }
 0x2bd   :  { %748 = vst [vmem:[#allocation11] sm:$0xff] %v745_v17 }
 0x2be   :  { %759 = dma.vmem_to_hbm [thread:$0]  %s755_s26, 128, %s757_s29, [#allocation4]  }
 0x2c2   :  { %v746_v21 = vpop.f32.mrf.mxu0 }
 0x2c3   :  { %1188 = dma.done.wait [#allocation4], 128  }
 0x2c4   :  { %1189 = vsyncadd [#allocation4], 4294967168 }
 0x2c5   :  { %764 = vsyncpa [#allocation3], 1 }
 0x2c6   :  { %765 = vsyncpa [#allocation6], 1 }
 0x2c7   :  { %766 = vsyncpa [#allocation9], 1 }
 0x2c8   :  { %767 = vsyncpa [#allocation4], 1 }

</bundles_post_ra>
